<compile_context>
chip_gen: v5e
topology: v5e:2x2
jax: 0.10.0
libtpu: 0.0.40
codegen_flags: <defaults>
</compile_context>

<pallas_src>
import functools

import jax
import jax.numpy as jnp
from jax.experimental import pallas as pl
from jax.experimental.pallas import tpu as pltpu

block_size = 8
dropout = 0.0          # p = 0 -> identity; nothing to implement in the kernel
n_embd = 16


def _block_kernel(x_ref, w_ref, p_ref, o_ref, attn_ref, *,
                  batch, seq, n_heads, head_size, scale, eps):
    # x_ref    : (B*T, C)        activations (pre-Linear; also the residual)
    # w_ref    : (C, 3*H*Dh)     fused (Linear ∘ QKV) weight, columns = [K | Q | V]
    # p_ref    : (3, 3*H*Dh)     row 0 = fused bias, row 1 = gamma (zero-padded),
    #                            row 2 = beta (zero-padded)
    # o_ref    : (B*T, C)        output
    # attn_ref : (B*T, C)        VMEM scratch for the concatenated head outputs
    BT, C = x_ref.shape
    B, T = batch, seq
    HD = n_heads * head_size

    x = x_ref[...]                                                    # (BT, C)

    # fused Linear + QKV projection for all heads: ONE wide MXU matmul + bias
    qkv = jnp.dot(x, w_ref[...],
                  preferred_element_type=jnp.float32) + p_ref[0:1, :]  # (BT, 3*HD)
    # tile-aligned leading-dim split (16 rows -> 2 x 8 sublane tiles): no relayout
    qkv3 = qkv.reshape(B, T, 3 * HD)                                   # (B, T, 3*HD)

    # causal (tril) mask, broadcast over the batch dim
    row = jax.lax.broadcasted_iota(jnp.int32, (T, T), 0)
    col = jax.lax.broadcasted_iota(jnp.int32, (T, T), 1)
    causal = row >= col
    neg_inf = jnp.float32(-jnp.inf)

    # tiny static head count -> unrolled; batch dim handled by batched dot_general
    for h in range(n_heads):
        lo = h * head_size
        k = qkv3[:, :, lo:lo + head_size]                              # (B, T, Dh)
        q = qkv3[:, :, HD + lo:HD + lo + head_size]                    # (B, T, Dh)
        v = qkv3[:, :, 2 * HD + lo:2 * HD + lo + head_size]            # (B, T, Dh)

        # q @ k^T batched over B, no explicit transpose ('bqd,bkd->bqk')
        wei = jax.lax.dot_general(
            q, k, (((2,), (2,)), ((0,), (0,))),
            preferred_element_type=jnp.float32) * scale                # (B, T, T)
        wei = jnp.where(causal, wei, neg_inf)

        # numerically stable softmax with an EXACT divide (matches reference)
        wei = wei - jnp.max(wei, axis=-1, keepdims=True)
        probs = jnp.exp(wei)
        probs = probs / jnp.sum(probs, axis=-1, keepdims=True)

        # p @ v batched over B ('bqk,bkd->bqd')
        o = jax.lax.dot_general(
            probs, v, (((2,), (1,)), ((0,), (0,))),
            preferred_element_type=jnp.float32)                        # (B, T, Dh)

        # write the head output straight into its lane slot of the (BT, C) slab
        # (no jnp.concatenate relayouts)
        attn_ref[:, lo:lo + head_size] = o.reshape(BT, head_size)

    attn = attn_ref[...]                                               # (BT, C)

    # LayerNorm over channels (biased variance, like torch) + affine
    mean = jnp.mean(attn, axis=-1, keepdims=True)
    cen = attn - mean
    var = jnp.mean(cen * cen, axis=-1, keepdims=True)
    normed = cen * jax.lax.rsqrt(var + eps)
    res = normed * p_ref[1:2, 0:C] + p_ref[2:3, 0:C]

    # residual add; single store of the whole output
    o_ref[...] = (x + res).astype(o_ref.dtype)


def block_forward(x, lin_w, lin_b, key_w, query_w, value_w, ln_gamma, ln_beta,
                  eps=1e-5):
    """x: (B,T,C); lin_w: (C,C) torch-layout; key/query/value: (1,H,C,Dh);
    ln_gamma/ln_beta: (C,). Returns (B,T,C)."""
    B, T, C = x.shape
    _, H, _, Dh = key_w.shape
    HD = H * Dh
    scale = C ** (-0.5)

    # stack projection weights into one (C, 3*H*Dh) matrix: [K | Q | V],
    # head h occupying columns [h*Dh:(h+1)*Dh] inside each block.
    def _stack(w):                                        # (1,H,C,Dh) -> (C, H*Dh)
        return jnp.transpose(w[0], (1, 0, 2)).reshape(C, H * Dh)

    wqkv = jnp.concatenate([_stack(key_w), _stack(query_w), _stack(value_w)],
                           axis=1)                        # (C, 3*HD)

    # Fold the Linear layer into the QKV projection (weights-only, amortizable):
    #   (x @ Wl^T + b) @ Wqkv  ==  x @ (Wl^T @ Wqkv) + (b @ Wqkv)
    w_fused = jnp.dot(lin_w.T, wqkv)                      # (C, 3*HD)
    b_fused = jnp.dot(lin_b[None, :], wqkv)               # (1, 3*HD)

    # pack all small per-channel params into ONE input -> one DMA instead of four
    pad = 3 * HD - C
    gamma_row = jnp.pad(ln_gamma, (0, pad))[None, :]      # (1, 3*HD)
    beta_row = jnp.pad(ln_beta, (0, pad))[None, :]        # (1, 3*HD)
    params = jnp.concatenate([b_fused, gamma_row, beta_row],
                             axis=0).astype(jnp.float32)  # (3, 3*HD)

    # flatten in the wrapper (free, contiguous) -> 2-D I/O, no in-kernel reshape
    x_flat = x.reshape(B * T, C)

    kernel = functools.partial(_block_kernel, batch=B, seq=T, n_heads=H,
                               head_size=Dh, scale=scale, eps=eps)

    # no grid: the whole problem sits in VMEM; full-array specs, no pipelining
    out_flat = pl.pallas_call(
        kernel,
        out_shape=jax.ShapeDtypeStruct((B * T, C), x.dtype),
        scratch_shapes=[pltpu.VMEM((B * T, C), jnp.float32)],
    )(x_flat, w_fused, params)

    return out_flat.reshape(B, T, C)


def _reference(x, lin_w, lin_b, key_w, query_w, value_w, ln_gamma, ln_beta,
               eps=1e-5):
    """Pure-JAX transcription of the PyTorch Block.forward, for verification."""
    B, T, C = x.shape
    h = x @ lin_w.T + lin_b                                      # Linear
    xh = h[:, None, :, :]                                        # (B,1,T,C)
    k = jnp.matmul(xh, key_w)                                    # (B,H,T,Dh)
    q = jnp.matmul(xh, query_w)
    v = jnp.matmul(xh, value_w)
    wei = jnp.matmul(q, jnp.swapaxes(k, -1, -2)) * C ** (-0.5)
    tril = jnp.tril(jnp.ones((block_size, block_size), x.dtype))
    wei = jnp.where(tril[:T, :T] == 0, -jnp.inf, wei)
    wei = jax.nn.softmax(wei, axis=-1)
    out = jnp.matmul(wei, v)                                     # (B,H,T,Dh)
    out = jnp.swapaxes(out, 1, 2).reshape(B, T, -1)              # (B,T,C)
    mean = out.mean(axis=-1, keepdims=True)
    var = out.var(axis=-1, keepdims=True)
    normed = (out - mean) / jnp.sqrt(var + eps)
    res = normed * ln_gamma + ln_beta
    return x + res


if __name__ == "__main__":
    # shapes implied by the module: B=2, T=block_size=8, C=n_embd=16, 2 heads of size 8
    n_heads = 2
    head_size = n_embd // n_heads
    B, T, C = 2, block_size, n_embd

    key = jax.random.PRNGKey(0)
    kx, kw, kb, kk, kq, kv, kg, kbeta = jax.random.split(key, 8)
    x = jax.random.normal(kx, (B, T, C), dtype=jnp.float32)
    lin_w = jax.random.normal(kw, (C, C), dtype=jnp.float32) * 0.2
    lin_b = jax.random.normal(kb, (C,), dtype=jnp.float32) * 0.2
    key_w = jax.random.normal(kk, (1, n_heads, n_embd, head_size), dtype=jnp.float32)
    query_w = jax.random.normal(kq, (1, n_heads, n_embd, head_size), dtype=jnp.float32)
    value_w = jax.random.normal(kv, (1, n_heads, n_embd, head_size), dtype=jnp.float32)
    ln_gamma = 1.0 + 0.1 * jax.random.normal(kg, (C,), dtype=jnp.float32)
    ln_beta = 0.1 * jax.random.normal(kbeta, (C,), dtype=jnp.float32)

    out = block_forward(x, lin_w, lin_b, key_w, query_w, value_w, ln_gamma, ln_beta)
    out = jax.block_until_ready(out)

    ref = _reference(x, lin_w, lin_b, key_w, query_w, value_w, ln_gamma, ln_beta)
    assert out.shape == (B, T, C), out.shape
    # all ops are exact f32 now; tolerance only covers summation-order effects
    # of folding the Linear weight into the QKV weight.
    assert jnp.allclose(out, ref, atol=2e-3, rtol=2e-3), "mismatch vs reference"

    print("KERNEL_OK")
</pallas_src>

<mosaic_0001>
module attributes {stable_mosaic.version = 11 : i64} {
  func.func @_block_kernel(%arg0: memref<16x16xf32, #tpu.memory_space<vmem>>, %arg1: memref<16x48xf32, #tpu.memory_space<vmem>>, %arg2: memref<3x48xf32, #tpu.memory_space<vmem>>, %arg3: memref<16x16xf32, #tpu.memory_space<vmem>>, %arg4: memref<16x16xf32, #tpu.memory_space<vmem>>) attributes {dimension_semantics = [], scalar_prefetch = 0 : i64, scratch_operands = 1 : i64, tpu.core_type = #tpu.core_type<tc>} {
    %c0 = arith.constant 0 : index
    %c0_0 = arith.constant 0 : index
    %0 = vector.load %arg0[%c0, %c0_0] : memref<16x16xf32, #tpu.memory_space<vmem>>, vector<16x16xf32>
    %c0_1 = arith.constant 0 : index
    %c0_2 = arith.constant 0 : index
    %1 = vector.load %arg1[%c0_1, %c0_2] : memref<16x48xf32, #tpu.memory_space<vmem>>, vector<16x48xf32>
    %cst = arith.constant dense<0.000000e+00> : vector<16x48xf32>
    %2 = tpu.matmul %0, %1, %cst {dimension_numbers = #tpu.dot_dimension_numbers<[1], [0], [0], [1], [0, 0, 1, 1], [], []>} : vector<16x16xf32>, vector<16x48xf32>, vector<16x48xf32> -> vector<16x48xf32>
    %c0_3 = arith.constant 0 : index
    %c0_4 = arith.constant 0 : index
    %3 = vector.load %arg2[%c0_3, %c0_4] : memref<3x48xf32, #tpu.memory_space<vmem>>, vector<1x48xf32>
    %4 = vector.broadcast %3 : vector<1x48xf32> to vector<16x48xf32>
    %5 = arith.addf %2, %4 : vector<16x48xf32>
    %6 = vector.shape_cast %5 : vector<16x48xf32> to vector<2x8x48xf32>
    %7 = tpu.iota {dimensions = array<i32: 0>} : vector<8x8xi32>
    %8 = tpu.iota {dimensions = array<i32: 1>} : vector<8x8xi32>
    %9 = arith.cmpi sge, %7, %8 : vector<8x8xi32>
    %10 = vector.extract_strided_slice %6 {offsets = [0, 0, 0], sizes = [2, 8, 8], strides = [1, 1, 1]} : vector<2x8x48xf32> to vector<2x8x8xf32>
    %11 = vector.extract_strided_slice %6 {offsets = [0, 0, 16], sizes = [2, 8, 8], strides = [1, 1, 1]} : vector<2x8x48xf32> to vector<2x8x8xf32>
    %12 = vector.extract_strided_slice %6 {offsets = [0, 0, 32], sizes = [2, 8, 8], strides = [1, 1, 1]} : vector<2x8x48xf32> to vector<2x8x8xf32>
    %cst_5 = arith.constant dense<0.000000e+00> : vector<2x8x8xf32>
    %13 = tpu.matmul %11, %10, %cst_5 {dimension_numbers = #tpu.dot_dimension_numbers<[2], [2], [1], [1], [0, 0, 0, 1, 1, 1], [0], [0]>} : vector<2x8x8xf32>, vector<2x8x8xf32>, vector<2x8x8xf32> -> vector<2x8x8xf32>
    %cst_6 = arith.constant 2.500000e-01 : f32
    %14 = vector.broadcast %cst_6 : f32 to vector<2x8x8xf32>
    %15 = arith.mulf %13, %14 : vector<2x8x8xf32>
    %cst_7 = arith.constant 0xFF800000 : f32
    %16 = vector.shape_cast %9 : vector<8x8xi1> to vector<1x8x8xi1>
    %17 = vector.broadcast %16 : vector<1x8x8xi1> to vector<2x8x8xi1>
    %18 = vector.broadcast %cst_7 : f32 to vector<2x8x8xf32>
    %19 = arith.select %17, %15, %18 : vector<2x8x8xi1>, vector<2x8x8xf32>
    %cst_8 = arith.constant dense<0xFF800000> : vector<2x8xf32>
    %20 = vector.multi_reduction <maximumf>, %19, %cst_8 [2] : vector<2x8x8xf32> to vector<2x8xf32>
    %21 = vector.shape_cast %20 : vector<2x8xf32> to vector<2x8x1xf32>
    %22 = vector.broadcast %21 : vector<2x8x1xf32> to vector<2x8x8xf32>
    %23 = arith.subf %19, %22 : vector<2x8x8xf32>
    %24 = math.exp %23 : vector<2x8x8xf32>
    %cst_9 = arith.constant dense<0.000000e+00> : vector<2x8xf32>
    %25 = vector.multi_reduction <add>, %24, %cst_9 [2] : vector<2x8x8xf32> to vector<2x8xf32>
    %26 = vector.shape_cast %25 : vector<2x8xf32> to vector<2x8x1xf32>
    %27 = vector.broadcast %26 : vector<2x8x1xf32> to vector<2x8x8xf32>
    %28 = arith.divf %24, %27 : vector<2x8x8xf32>
    %cst_10 = arith.constant dense<0.000000e+00> : vector<2x8x8xf32>
    %29 = tpu.matmul %28, %12, %cst_10 {dimension_numbers = #tpu.dot_dimension_numbers<[2], [1], [1], [2], [0, 0, 0, 1, 1, 2], [0], [0]>} : vector<2x8x8xf32>, vector<2x8x8xf32>, vector<2x8x8xf32> -> vector<2x8x8xf32>
    %30 = vector.shape_cast %29 : vector<2x8x8xf32> to vector<16x8xf32>
    %c0_11 = arith.constant 0 : index
    %c0_12 = arith.constant 0 : index
    %31 = vector.load %arg4[%c0_11, %c0_12] : memref<16x16xf32, #tpu.memory_space<vmem>>, vector<16x8xf32>
    tpu.vector_store %arg4[%c0_11, %c0_12], %30 {strides = array<i32>} : memref<16x16xf32, #tpu.memory_space<vmem>>, vector<16x8xf32>,
    %32 = vector.extract_strided_slice %6 {offsets = [0, 0, 8], sizes = [2, 8, 8], strides = [1, 1, 1]} : vector<2x8x48xf32> to vector<2x8x8xf32>
    %33 = vector.extract_strided_slice %6 {offsets = [0, 0, 24], sizes = [2, 8, 8], strides = [1, 1, 1]} : vector<2x8x48xf32> to vector<2x8x8xf32>
    %34 = vector.extract_strided_slice %6 {offsets = [0, 0, 40], sizes = [2, 8, 8], strides = [1, 1, 1]} : vector<2x8x48xf32> to vector<2x8x8xf32>
    %cst_13 = arith.constant dense<0.000000e+00> : vector<2x8x8xf32>
    %35 = tpu.matmul %33, %32, %cst_13 {dimension_numbers = #tpu.dot_dimension_numbers<[2], [2], [1], [1], [0, 0, 0, 1, 1, 1], [0], [0]>} : vector<2x8x8xf32>, vector<2x8x8xf32>, vector<2x8x8xf32> -> vector<2x8x8xf32>
    %cst_14 = arith.constant 2.500000e-01 : f32
    %36 = vector.broadcast %cst_14 : f32 to vector<2x8x8xf32>
    %37 = arith.mulf %35, %36 : vector<2x8x8xf32>
    %cst_15 = arith.constant 0xFF800000 : f32
    %38 = vector.shape_cast %9 : vector<8x8xi1> to vector<1x8x8xi1>
    %39 = vector.broadcast %38 : vector<1x8x8xi1> to vector<2x8x8xi1>
    %40 = vector.broadcast %cst_15 : f32 to vector<2x8x8xf32>
    %41 = arith.select %39, %37, %40 : vector<2x8x8xi1>, vector<2x8x8xf32>
    %cst_16 = arith.constant dense<0xFF800000> : vector<2x8xf32>
    %42 = vector.multi_reduction <maximumf>, %41, %cst_16 [2] : vector<2x8x8xf32> to vector<2x8xf32>
    %43 = vector.shape_cast %42 : vector<2x8xf32> to vector<2x8x1xf32>
    %44 = vector.broadcast %43 : vector<2x8x1xf32> to vector<2x8x8xf32>
    %45 = arith.subf %41, %44 : vector<2x8x8xf32>
    %46 = math.exp %45 : vector<2x8x8xf32>
    %cst_17 = arith.constant dense<0.000000e+00> : vector<2x8xf32>
    %47 = vector.multi_reduction <add>, %46, %cst_17 [2] : vector<2x8x8xf32> to vector<2x8xf32>
    %48 = vector.shape_cast %47 : vector<2x8xf32> to vector<2x8x1xf32>
    %49 = vector.broadcast %48 : vector<2x8x1xf32> to vector<2x8x8xf32>
    %50 = arith.divf %46, %49 : vector<2x8x8xf32>
    %cst_18 = arith.constant dense<0.000000e+00> : vector<2x8x8xf32>
    %51 = tpu.matmul %50, %34, %cst_18 {dimension_numbers = #tpu.dot_dimension_numbers<[2], [1], [1], [2], [0, 0, 0, 1, 1, 2], [0], [0]>} : vector<2x8x8xf32>, vector<2x8x8xf32>, vector<2x8x8xf32> -> vector<2x8x8xf32>
    %52 = vector.shape_cast %51 : vector<2x8x8xf32> to vector<16x8xf32>
    %c0_19 = arith.constant 0 : index
    %c8 = arith.constant 8 : index
    %53 = vector.load %arg4[%c0_19, %c8] : memref<16x16xf32, #tpu.memory_space<vmem>>, vector<16x8xf32>
    tpu.vector_store %arg4[%c0_19, %c8], %52 {strides = array<i32>} : memref<16x16xf32, #tpu.memory_space<vmem>>, vector<16x8xf32>,
    %c0_20 = arith.constant 0 : index
    %c0_21 = arith.constant 0 : index
    %54 = vector.load %arg4[%c0_20, %c0_21] : memref<16x16xf32, #tpu.memory_space<vmem>>, vector<16x16xf32>
    %cst_22 = arith.constant dense<0.000000e+00> : vector<16xf32>
    %55 = vector.multi_reduction <add>, %54, %cst_22 [1] : vector<16x16xf32> to vector<16xf32>
    %56 = vector.shape_cast %55 : vector<16xf32> to vector<16x1xf32>
    %cst_23 = arith.constant 1.600000e+01 : f32
    %57 = vector.broadcast %cst_23 : f32 to vector<16x1xf32>
    %58 = arith.divf %56, %57 : vector<16x1xf32>
    %59 = vector.broadcast %58 : vector<16x1xf32> to vector<16x16xf32>
    %60 = arith.subf %54, %59 : vector<16x16xf32>
    %61 = arith.mulf %60, %60 : vector<16x16xf32>
    %cst_24 = arith.constant dense<0.000000e+00> : vector<16xf32>
    %62 = vector.multi_reduction <add>, %61, %cst_24 [1] : vector<16x16xf32> to vector<16xf32>
    %63 = vector.shape_cast %62 : vector<16xf32> to vector<16x1xf32>
    %cst_25 = arith.constant 1.600000e+01 : f32
    %64 = vector.broadcast %cst_25 : f32 to vector<16x1xf32>
    %65 = arith.divf %63, %64 : vector<16x1xf32>
    %cst_26 = arith.constant 9.99999974E-6 : f32
    %66 = vector.broadcast %cst_26 : f32 to vector<16x1xf32>
    %67 = arith.addf %65, %66 : vector<16x1xf32>
    %68 = math.rsqrt %67 : vector<16x1xf32>
    %69 = vector.broadcast %68 : vector<16x1xf32> to vector<16x16xf32>
    %70 = arith.mulf %60, %69 : vector<16x16xf32>
    %c1 = arith.constant 1 : index
    %c0_27 = arith.constant 0 : index
    %71 = vector.load %arg2[%c1, %c0_27] : memref<3x48xf32, #tpu.memory_space<vmem>>, vector<1x16xf32>
    %72 = vector.broadcast %71 : vector<1x16xf32> to vector<16x16xf32>
    %73 = arith.mulf %70, %72 : vector<16x16xf32>
    %c2 = arith.constant 2 : index
    %c0_28 = arith.constant 0 : index
    %74 = vector.load %arg2[%c2, %c0_28] : memref<3x48xf32, #tpu.memory_space<vmem>>, vector<1x16xf32>
    %75 = vector.broadcast %74 : vector<1x16xf32> to vector<16x16xf32>
    %76 = arith.addf %73, %75 : vector<16x16xf32>
    %77 = arith.addf %0, %76 : vector<16x16xf32>
    %c0_29 = arith.constant 0 : index
    %c0_30 = arith.constant 0 : index
    %78 = vector.load %arg3[%c0_29, %c0_30] : memref<16x16xf32, #tpu.memory_space<vmem>>, vector<16x16xf32>
    tpu.vector_store %arg3[%c0_29, %c0_30], %77 {strides = array<i32>} : memref<16x16xf32, #tpu.memory_space<vmem>>, vector<16x16xf32>,
    return
  }
}

</mosaic_0001>

<bundles_post_ra>
// kernel: tpu_custom_call.1
= control target key start
LH: loop header
LB: loop body
LE: loop exit
PB: predicated region body
PF: predicated region fallthrough
CT: control target
= control target key end

     0   :  { %8 = vsyncpa [#allocation4], 0  ;;  %s803_s0 = inlined_call_operand.hbm [shape: f32[16,16], index: 0, kind: input, shape index: {}]   ;;  %s804_s1 = inlined_call_operand.hbm [shape: f32[16,48], index: 1, kind: input, shape index: {}]   ;;  %s805_s2 = inlined_call_operand.hbm [shape: f32[3,48], index: 2, kind: input, shape index: {}]   ;;  %s806_s3 = inlined_call_operand.hbm [shape: f32[16,16], index: 3, kind: output, shape index: {}]  }
   0x1   :  { %9 = vsyncpa [#allocation7], 0 }
   0x2   :  { %10 = vsyncpa [#allocation5], 0  ;;  %s28_s14 = sshll.u32 %s804_s1, 4  ;;  %s673_s15 = smov [#allocation6]   ;;  %s29_s14 = int_to_ptr.hbm [resolvable:$true] %s28_s14 }
   0x3   :  { %s30_s16 = sshll.u32 %s673_s15, 4  ;;  %s15_s19 = sshll.u32 %s803_s0, 4  ;;  %s31_s16 = int_to_ptr.vmem [resolvable:$true] %s30_s16  ;;  %s16_s19 = int_to_ptr.hbm [resolvable:$true] %s15_s19 }
   0x4   :  { %s674_s20 = smov 128   ;;  %s675_s21 = smov 8  }
   0x5   :  { %36 = dma.hbm_to_vmem [thread:$0]  %s29_s14, 256, %s31_s16, [#allocation7], %s674_s20, %s674_s20, %s675_s21  }
   0x6   :  { %s676_s22 = smov [#allocation3]   ;;  %s42_s1 = sshll.u32 %s805_s2, 4  ;;  %s43_s1 = int_to_ptr.hbm [resolvable:$true] %s42_s1 }
   0x7   :  { %s17_s23 = sshll.u32 %s676_s22, 4  ;;  %s677_s0 = smov [#allocation8]   ;;  %s18_s23 = int_to_ptr.vmem [resolvable:$true] %s17_s23 }
   0x8   :  { %23 = dma.hbm_to_vmem [thread:$0]  %s16_s19, 256, %s18_s23, [#allocation4], %s674_s20, %s674_s20, %s675_s21  }
   0x9   :  { %s44_s26 = sshll.u32 %s677_s0, 4  ;;  %s45_s26 = int_to_ptr.vmem [resolvable:$true] %s44_s26 }
   0xa   :  { %47 = dma.hbm_to_vmem [thread:$0]  %s43_s1, 64, %s45_s26, [#allocation7]  }
   0xb   :  { %667 = dma.done.wait [#allocation4], 256  }
   0xc   :  { %668 = vsyncadd [#allocation4], 4294967040 }
   0xd   :  { %669 = dma.done.wait [#allocation7], 320  }
   0xe   :  { %670 = vsyncadd [#allocation7], 4294966976  ;;  %v63_v0 = vld [vmem:[#allocation6 + $0x8] sm:$0xff]  ;;  %v62_v1 = vld [vmem:[#allocation6] sm:$0xff]  ;;  %vm66_vm0 = vcmask 130048   ;;  %vm104_vm1 = vcmask 64512   ;;  %v96_v15 = vlaneseq }
   0xf   :  { %87 = vmatpush.msra.mxu0 %v63_v0  ;;  %v720_v2 = vld [vmem:[#allocation3] sm:$0xff]  ;;  %v724_v3 = vld [vmem:[#allocation3 + $0x8] sm:$0xff]  ;;  %s678_s2 = smov 104   ;;  %s679_s27 = smov 120  }
  0x10   :  { %v546_v4 = vld [vmem:[#allocation8] ss:$0 sm:$0xff]  ;;  %s680_s28 = smov 112   ;;  %v97_v16 = vshrl.u32 %v96_v15, 7  ;;  %v99_v17 = vand.u32 127, %v96_v15  ;;  %s681_s29 = smov 96  }
  0x11   :  { %88 = vmatpush.msra.mxu0 %v62_v1  ;;  %s682_s30 = smov 88   ;;  %s684_s4 = smov [#allocation9]  }
  0x12   :  { %520 = vmatmul.msk.f32.vlgmr.msra.gmra.mxu0 %vm66_vm0, %v720_v2  ;;  %vm100_vm2 = vcmp.ge.s32.totalorder %v97_v16, %v99_v17  ;;  %s504_s5 = sshll.u32 %s684_s4, 4  ;;  %s506_s8 = sshll.u32 %s806_s3, 4  ;;  %s505_s5 = int_to_ptr.vmem [resolvable:$true] %s504_s5  ;;  %s507_s8 = int_to_ptr.hbm [resolvable:$true] %s506_s8 }
  0x1a   :  { %521 = vmatmul.msk.f32.gmra.mxu0 %vm66_vm0, %v724_v3 }
  0x8f   :  { %v90_v5 = vpop.f32.mrf.mxu0 }
  0x90   :  { %v728_v6 = vadd.f32 %v546_v4, %v90_v5 }
  0x92   :  { %264 = vrot.lane.b32.xlu2 %v728_v6, %s678_s2  ;;  %266 = vrot.lane.b32.xlu1 %v728_v6, %s679_s27 }
  0x93   :  { %102 = vrot.lane.b32.xlu0 %v728_v6, %s680_s28  ;;  %522 = vmatpush.xpose.msk.msra.mxu1 %vm104_vm1, %v728_v6 }
  0x97   :  { %v93_v7 = vpop.f32.mrf.mxu0 }
  0x98   :  { %v735_v8 = vadd.f32 %v546_v4, %v93_v7 }
  0x9a   :  { %524 = vmatpush.xpose.msk.msra.mxu2 %vm104_vm1, %v735_v8  ;;  %292 = vrot.lane.b32.xlu2 %v735_v8, %s678_s2 }
  0x9b   :  { %294 = vrot.lane.b32.xlu1 %v735_v8, %s679_s27  ;;  %130 = vrot.lane.b32.xlu0 %v735_v8, %s680_s28 }
  0xec   :  { %v265_v11 = vpop.permute.xlu2 %264 }
  0xf4   :  { %v293_v14 = vpop.permute.xlu2 %292 }
 0x104   :  { %v267_v9 = vpop.permute.xlu1 %266 }
 0x105   :  { %v103_v10 = vpop.permute.xlu0 %102  ;;  %528 = vmatpush.xpose.msk.msrb.mxu1 %vm104_vm1, %v267_v9 }
 0x106   :  { %523 = vmatmul.msk.f32.vlgmr.msra.gmra.mxu1 %vm104_vm1, %v103_v10 }
 0x10d   :  { %v295_v12 = vpop.permute.xlu1 %294  ;;  %v131_v13 = vpop.permute.xlu0 %130 }
 0x10e   :  { %525 = vmatmul.msk.f32.vlgmr.msra.gmra.mxu2 %vm104_vm1, %v131_v13  ;;  %529 = vmatmul.msk.f32.vlgmr.msrb.gmra.mxu1 %vm104_vm1, %v265_v11 }
 0x10f   :  { %530 = vmatpush.xpose.msk.msrb.mxu2 %vm104_vm1, %v295_v12 }
 0x116   :  { %531 = vmatmul.msk.f32.vlgmr.msrb.gmra.mxu2 %vm104_vm1, %v293_v14 }
 0x183   :  { %v126_v18 = vpop.f32.mrf.mxu1 }
 0x184   :  { %v156_v19 = vmul.f32 0.25, %v126_v18 }
 0x186   :  { %v160_v20 = vsel %vm100_vm2, %v156_v19, -inf }
 0x187   :  { %v162_v21 = vsel %vm104_vm1, %v160_v20, -inf }
 0x188   :  { %163 = vmax.xlane.f32.xlu0 %v162_v21 }
 0x18b   :  { %v289_v22 = vpop.f32.mrf.mxu1 }
 0x18c   :  { %v320_v23 = vmul.f32 0.25, %v289_v22 }
 0x18e   :  { %v322_v24 = vsel %vm100_vm2, %v320_v23, -inf }
 0x18f   :  { %v324_v25 = vsel %vm104_vm1, %v322_v24, -inf }
 0x190   :  { %325 = vmax.xlane.f32.xlu2 %v324_v25 }
 0x191   :  { %v153_v26 = vpop.f32.mrf.mxu2 }
 0x192   :  { %v157_v27 = vmul.f32 0.25, %v153_v26 }
 0x194   :  { %v161_v28 = vsel %vm100_vm2, %v157_v27, -inf }
 0x195   :  { %v165_v29 = vsel %vm104_vm1, %v161_v28, -inf }
 0x196   :  { %166 = vmax.xlane.f32.xlu1 %v165_v29 }
 0x199   :  { %v317_v30 = vpop.f32.mrf.mxu2 }
 0x19a   :  { %v321_v31 = vmul.f32 0.25, %v317_v30 }
 0x19c   :  { %210 = vrot.lane.b32.xlu0 %v728_v6, %s681_s29  ;;  %v323_v32 = vsel %vm100_vm2, %v321_v31, -inf }
 0x19d   :  { %v327_v33 = vsel %vm104_vm1, %v323_v32, -inf }
 0x19e   :  { %328 = vmax.xlane.f32.xlu2 %v327_v33 }
 0x1fb   :  { %v164_v34 = vpop.xlane.xlu0 %163 }
 0x1fc   :  { %v168_v35 = vsub.f32 %v160_v20, %v164_v34 }
 0x1fe   :  { %v170_v36 = vmul.f32 1.442695, %v168_v35 }
 0x200   :  { %549 = vpow2.f32 %v170_v36 }
 0x203   :  { %v326_v37 = vpop.xlane.xlu2 %325 }
 0x204   :  { %v330_v38 = vsub.f32 %v322_v24, %v326_v37 }
 0x206   :  { %v550_v39 = vpop.eup %549  ;;  %v332_v40 = vmul.f32 1.442695, %v330_v38 }
 0x207   :  { %v174_v41 = vsel %vm104_vm1, %v550_v39, 0.0 }
 0x208   :  { %551 = vpow2.f32 %v332_v40  ;;  %175 = vadd.xlane.f32.xlu0 %v174_v41 }
 0x209   :  { %v167_v42 = vpop.xlane.xlu1 %166 }
 0x20a   :  { %v169_v43 = vsub.f32 %v161_v28, %v167_v42 }
 0x20c   :  { %v172_v44 = vmul.f32 1.442695, %v169_v43 }
 0x20e   :  { %v759_v45 = vpop.eup %551  ;;  %553 = vpow2.f32 %v172_v44  ;;  %v211_v46 = vpop.permute.xlu0 %210 }
 0x20f   :  { %231 = vmatpush.msra.mxu3 %v211_v46  ;;  %v336_v47 = vsel %vm104_vm1, %v759_v45, 0.0 }
 0x210   :  { %337 = vadd.xlane.f32.xlu2 %v336_v47 }
 0x211   :  { %v329_v48 = vpop.xlane.xlu2 %328 }
 0x212   :  { %v331_v49 = vsub.f32 %v323_v32, %v329_v48 }
 0x214   :  { %v554_v50 = vpop.eup %553  ;;  %v334_v51 = vmul.f32 1.442695, %v331_v49 }
 0x215   :  { %v177_v52 = vsel %vm104_vm1, %v554_v50, 0.0 }
 0x216   :  { %555 = vpow2.f32 %v334_v51  ;;  %178 = vadd.xlane.f32.xlu1 %v177_v52 }
 0x21c   :  { %v764_v53 = vpop.eup %555  ;;  %398 = vrot.lane.b32.xlu0 %v735_v8, %s682_s30 }
 0x21d   :  { %v339_v54 = vsel %vm104_vm1, %v764_v53, 0.0 }
 0x21e   :  { %340 = vadd.xlane.f32.xlu1 %v339_v54  ;;  %v683_v54 = vmov 16.0  }
 0x228   :  { %236 = vrot.lane.b32.xlu2 %v735_v8, %s681_s29 }
 0x237   :  { %372 = vrot.lane.b32.xlu1 %v728_v6, %s682_s30 }
 0x27b   :  { %v176_v55 = vpop.xlane.xlu0 %175 }
 0x27c   :  { %557 = vrcp.f32 %v176_v55  ;;  %v191_v60 = vand.u32 2147483648, %v176_v55  ;;  %v189_v62 = vand.u32 2147483647, %v176_v55  ;;  %vm185_vm4 = vweird.f32 %v176_v55 }
 0x27e   :  { %v192_v1 = vor.u32 1.1754944e-38, %v191_v60  ;;  %vm190_vm6 = vcmp.eq.f32.partialorder %v189_v62, 8.507059e+37 }
 0x282   :  { %v558_v56 = vpop.eup %557 }
 0x283   :  { %v181_v57 = vmul.f32 %v558_v56, %v176_v55  ;;  %v772_v58 = vpop.xlane.xlu2 %337  ;;  %vm186_vm3 = vweird.f32 %v558_v56 }
 0x284   :  { %559 = vrcp.f32 %v772_v58  ;;  %vm187_vm5 = vmor %vm185_vm4, %vm186_vm3  ;;  %v353_v33 = vand.u32 2147483648, %v772_v58  ;;  %vm347_vm15 = vweird.f32 %v772_v58  ;;  %v351_v35 = vand.u32 2147483647, %v772_v58 }
 0x285   :  { %v182_v59 = vsub.f32 1.0, %v181_v57 }
 0x286   :  { %v354_v40 = vor.u32 1.1754944e-38, %v353_v33  ;;  %vm352_vm4 = vcmp.eq.f32.partialorder %v351_v35, 8.507059e+37 }
 0x287   :  { %v183_v61 = vmul.f32 %v558_v56, %v182_v59 }
 0x289   :  { %v179_v63 = vpop.xlane.xlu1 %178  ;;  %v184_v0 = vadd.f32 %v558_v56, %v183_v61 }
 0x28a   :  { %561 = vrcp.f32 %v179_v63  ;;  %v560_v9 = vpop.eup %559  ;;  %v206_v15 = vand.u32 2147483648, %v179_v63  ;;  %v204_v17 = vand.u32 2147483647, %v179_v63  ;;  %vm200_vm8 = vweird.f32 %v179_v63 }
 0x28b   :  { %v237_v4 = vpop.permute.xlu2 %236  ;;  %v188_v5 = vsel %vm187_vm5, %v558_v56, %v184_v0  ;;  %v343_v13 = vmul.f32 %v560_v9, %v772_v58  ;;  %vm348_vm12 = vweird.f32 %v560_v9  ;;  %vm432_vm5 = vcmask 130112  }
 0x28c   :  { %257 = vmatpush.msrb.mxu3 %v237_v4  ;;  %v193_v6 = vsel %vm190_vm6, %v192_v1, %v188_v5  ;;  %v207_v21 = vor.u32 1.1754944e-38, %v206_v15  ;;  %vm205_vm10 = vcmp.eq.f32.partialorder %v204_v17, 8.507059e+37  ;;  %vm349_vm3 = vmor %vm347_vm15, %vm348_vm12 }
 0x28d   :  { %v194_v7 = vmul.f32 %v550_v39, %v193_v6  ;;  %v344_v18 = vsub.f32 1.0, %v343_v13 }
 0x28e   :  { %v399_v8 = vpop.permute.xlu0 %398 }
 0x28f   :  { %526 = vmatmul.msk.f32.vlgmr.msra.gmra.mxu3 %vm104_vm1, %v194_v7  ;;  %419 = vmatpush.msrb.mxu0 %v399_v8  ;;  %v345_v25 = vmul.f32 %v560_v9, %v344_v18  ;;  %v547_v18 = vld [vmem:[#allocation8 + $0x1] ss:$0 sm:$0xff] }
 0x290   :  { %v562_v10 = vpop.eup %561 }
 0x291   :  { %v196_v11 = vmul.f32 %v562_v10, %v179_v63  ;;  %v341_v12 = vpop.xlane.xlu1 %340  ;;  %vm201_vm7 = vweird.f32 %v562_v10  ;;  %v346_v31 = vadd.f32 %v560_v9, %v345_v25 }
 0x292   :  { %563 = vrcp.f32 %v341_v12  ;;  %vm202_vm9 = vmor %vm200_vm8, %vm201_vm7  ;;  %v368_v28 = vand.u32 2147483648, %v341_v12  ;;  %v366_v30 = vand.u32 2147483647, %v341_v12  ;;  %vm362_vm13 = vweird.f32 %v341_v12 }
 0x293   :  { %v197_v14 = vsub.f32 1.0, %v196_v11  ;;  %v350_v38 = vsel %vm349_vm3, %v560_v9, %v346_v31  ;;  %565 = vrcp.f32 %v683_v54 }
 0x294   :  { %v369_v34 = vor.u32 1.1754944e-38, %v368_v28  ;;  %vm367_vm2 = vcmp.eq.f32.partialorder %v366_v30, 8.507059e+37  ;;  %v355_v41 = vsel %vm352_vm4, %v354_v40, %v350_v38 }
 0x295   :  { %v198_v16 = vmul.f32 %v562_v10, %v197_v14  ;;  %v356_v43 = vmul.f32 %v759_v45, %v355_v41 }
 0x297   :  { %v199_v19 = vadd.f32 %v562_v10, %v198_v16 }
 0x298   :  { %v564_v20 = vpop.eup %563 }
 0x299   :  { %v358_v22 = vmul.f32 %v564_v20, %v341_v12  ;;  %v203_v23 = vsel %vm202_vm9, %v562_v10, %v199_v19  ;;  %vm363_vm11 = vweird.f32 %v564_v20  ;;  %v566_v55 = vpop.eup %565 }
 0x29a   :  { %v208_v24 = vsel %vm205_vm10, %v207_v21, %v203_v23  ;;  %vm364_vm14 = vmor %vm362_vm13, %vm363_vm11  ;;  %v444_v56 = vmul.f32 16.0, %v566_v55  ;;  %v548_v21 = vld [vmem:[#allocation8 + $0x2] ss:$0 sm:$0xff] }
 0x29b   :  { %v359_v26 = vsub.f32 1.0, %v358_v22  ;;  %v209_v27 = vmul.f32 %v554_v50, %v208_v24 }
 0x29c   :  { %v445_v57 = vsub.f32 1.0, %v444_v56 }
 0x29d   :  { %v360_v29 = vmul.f32 %v564_v20, %v359_v26  ;;  %527 = vmatmul.msk.f32.vlgmr.msrb.gmra.mxu3 %vm104_vm1, %v209_v27 }
 0x29e   :  { %v446_v58 = vmul.f32 %v566_v55, %v445_v57 }
 0x29f   :  { %v361_v32 = vadd.f32 %v564_v20, %v360_v29 }
 0x2a0   :  { %v447_v59 = vadd.f32 %v566_v55, %v446_v58 }
 0x2a1   :  { %v365_v36 = vsel %vm364_vm14, %v564_v20, %v361_v32 }
 0x2a2   :  { %v370_v37 = vsel %vm367_vm2, %v369_v34, %v365_v36 }
 0x2a3   :  { %v371_v39 = vmul.f32 %v764_v53, %v370_v37 }
 0x2a5   :  { %533 = vmatmul.msk.f32.vlgmr.msrb.gmra.mxu0 %vm104_vm1, %v371_v39 }
 0x2a9   :  { %v373_v42 = vpop.permute.xlu1 %372 }
 0x2aa   :  { %393 = vmatpush.msra.mxu3 %v373_v42 }
 0x2ab   :  { %532 = vmatmul.msk.f32.vlgmr.msra.gmra.mxu3 %vm104_vm1, %v356_v43 }
 0x312   :  { %v233_v44 = vpop.f32.mrf.mxu3 }
 0x313   :  { %262 = vst.msk [vmem:[#allocation2] sm:$0xff] %vm104_vm1, %v233_v44 }
 0x320   :  { %v259_v46 = vpop.f32.mrf.mxu3 }
 0x321   :  { %263 = vst.msk [vmem:[#allocation2 + $0x8] sm:$0xff] %vm104_vm1, %v259_v46  ;;  %vm448_vm1 = vweird.f32 %v566_v55 }
 0x322   :  { %v421_v47 = vpop.f32.mrf.mxu0  ;;  %v449_v60 = vsel %vm448_vm1, %v566_v55, %v447_v59 }
 0x323   :  { %428 = vrot.lane.b32.xlu2 %v421_v47, %s675_s21 }
 0x32e   :  { %v395_v48 = vpop.f32.mrf.mxu3 }
 0x32f   :  { %426 = vrot.lane.b32.xlu0 %v395_v48, %s675_s21 }
 0x37d   :  { %v429_v49 = vpop.permute.xlu2 %428 }
 0x37e   :  { %434 = vst.msk [vmem:[#allocation2 + $0x8] sm:$0xff] %vm432_vm5, %v429_v49 }
 0x385   :  { %v436_v50 = vld [vmem:[#allocation2 + $0x8] sm:$0xff] }
 0x386   :  { %v440_v45 = vsel %vm66_vm0, %v436_v50, 0.0 }
 0x387   :  { %441 = vadd.xlane.f32.xlu0 %v440_v45 }
 0x3a1   :  { %v427_v51 = vpop.permute.xlu0 %426 }
 0x3a2   :  { %433 = vst.msk [vmem:[#allocation2] sm:$0xff] %vm432_vm5, %v427_v51 }
 0x3a9   :  { %v435_v52 = vld [vmem:[#allocation2] sm:$0xff] }
 0x3aa   :  { %v437_v53 = vsel %vm66_vm0, %v435_v52, 0.0 }
 0x3ab   :  { %438 = vadd.xlane.f32.xlu1 %v437_v53 }
 0x3fa   :  { %v442_v61 = vpop.xlane.xlu0 %441 }
 0x3fb   :  { %v451_v62 = vmul.f32 %v449_v60, %v442_v61 }
 0x3fd   :  { %v453_v63 = vsub.f32 %v436_v50, %v451_v62 }
 0x3ff   :  { %v455_v0 = vmul.f32 %v453_v63, %v453_v63 }
 0x401   :  { %v459_v1 = vsel %vm66_vm0, %v455_v0, 0.0 }
 0x402   :  { %460 = vadd.xlane.f32.xlu1 %v459_v1 }
 0x41e   :  { %v439_v4 = vpop.xlane.xlu1 %438 }
 0x41f   :  { %v450_v5 = vmul.f32 %v449_v60, %v439_v4 }
 0x421   :  { %v452_v6 = vsub.f32 %v435_v52, %v450_v5 }
 0x423   :  { %v454_v7 = vmul.f32 %v452_v6, %v452_v6 }
 0x425   :  { %v456_v8 = vsel %vm66_vm0, %v454_v7, 0.0 }
 0x426   :  { %457 = vadd.xlane.f32.xlu2 %v456_v8 }
 0x475   :  { %v461_v9 = vpop.xlane.xlu1 %460 }
 0x476   :  { %v463_v10 = vmul.f32 %v461_v9, %v449_v60 }
 0x478   :  { %v465_v11 = vadd.f32 1e-05, %v463_v10 }
 0x47a   :  { %567 = vrsqrt.f32 %v465_v11  ;;  %vm482_vm7 = vweird.f32 %v465_v11 }
 0x480   :  { %v568_v12 = vpop.eup %567 }
 0x481   :  { %v477_v13 = vmul.f32 %v568_v12, %v465_v11  ;;  %vm483_vm6 = vweird.f32 %v568_v12 }
 0x482   :  { %vm484_vm8 = vmor %vm482_vm7, %vm483_vm6 }
 0x483   :  { %v478_v14 = vmul.f32 %v568_v12, %v477_v13 }
 0x485   :  { %v479_v15 = vmul.f32 0.5, %v478_v14 }
 0x487   :  { %v480_v16 = vsub.f32 1.5, %v479_v15 }
 0x489   :  { %v481_v17 = vmul.f32 %v568_v12, %v480_v16 }
 0x48b   :  { %v485_v19 = vsel %vm484_vm8, %v568_v12, %v481_v17 }
 0x48c   :  { %v487_v20 = vmul.f32 %v485_v19, %v453_v63 }
 0x48e   :  { %v491_v22 = vmul.f32 %v547_v18, %v487_v20 }
 0x490   :  { %v495_v23 = vadd.f32 %v548_v21, %v491_v22 }
 0x492   :  { %v497_v24 = vadd.f32 %v495_v23, %v724_v3 }
 0x494   :  { %499 = vst.msk [vmem:[#allocation9 + $0x8] sm:$0xff] %vm66_vm0, %v497_v24 }
 0x499   :  { %v458_v25 = vpop.xlane.xlu2 %457 }
 0x49a   :  { %v462_v26 = vmul.f32 %v458_v25, %v449_v60 }
 0x49c   :  { %v464_v27 = vadd.f32 1e-05, %v462_v26 }
 0x49e   :  { %569 = vrsqrt.f32 %v464_v27  ;;  %vm472_vm10 = vweird.f32 %v464_v27 }
 0x4a4   :  { %v570_v28 = vpop.eup %569 }
 0x4a5   :  { %v467_v29 = vmul.f32 %v570_v28, %v464_v27  ;;  %vm473_vm9 = vweird.f32 %v570_v28 }
 0x4a6   :  { %vm474_vm11 = vmor %vm472_vm10, %vm473_vm9 }
 0x4a7   :  { %v468_v30 = vmul.f32 %v570_v28, %v467_v29 }
 0x4a9   :  { %v469_v31 = vmul.f32 0.5, %v468_v30 }
 0x4ab   :  { %v470_v32 = vsub.f32 1.5, %v469_v31 }
 0x4ad   :  { %v471_v33 = vmul.f32 %v570_v28, %v470_v32 }
 0x4af   :  { %v475_v34 = vsel %vm474_vm11, %v570_v28, %v471_v33 }
 0x4b0   :  { %v486_v35 = vmul.f32 %v475_v34, %v452_v6 }
 0x4b2   :  { %v490_v36 = vmul.f32 %v547_v18, %v486_v35 }
 0x4b4   :  { %v494_v3 = vadd.f32 %v548_v21, %v490_v36 }
 0x4b6   :  { %v496_v37 = vadd.f32 %v494_v3, %v720_v2 }
 0x4b8   :  { %498 = vst.msk [vmem:[#allocation9] sm:$0xff] %vm66_vm0, %v496_v37 }
 0x4b9   :  { %512 = dma.vmem_to_hbm [thread:$0]  %s505_s5, 256, %s507_s8, [#allocation5], %s674_s20, %s674_s20, %s675_s21  }
 0x4ba   :  { %671 = dma.done.wait [#allocation5], 256  }
 0x4bb   :  { %672 = vsyncadd [#allocation5], 4294967040 }
 0x4bc   :  { %517 = vsyncpa [#allocation4], 1 }
 0x4bd   :  { %518 = vsyncpa [#allocation7], 1 }
 0x4be   :  { %519 = vsyncpa [#allocation5], 1 }

</bundles_post_ra>
